<compile_context>
chip_gen: v5e
topology: v5e:2x2
jax: 0.10.0
libtpu: 0.0.40
codegen_flags: <defaults>
</compile_context>

<pallas_src>
import jax
import jax.numpy as jnp
from jax.experimental import pallas as pl
from jax.experimental.pallas import tpu as pltpu

SIGMA_DATA = 0.5
SIGMA_MIN = 0.002


def _silu(x):
    return x * jax.nn.sigmoid(x)


def consistency_kernel(sig_ref, w1t_ref, b1_ref, wt_ref, bt_ref,
                       w2bd_ref, b2_ref, csk_ref, cot_ref, x_ref, o_ref):
    # Single grid step; all of B lives on the sublane axis.
    Hd, C = w1t_ref.shape              # (32, 4)
    BC, M = x_ref.shape                # (8, 256)
    B = BC // C

    x = x_ref[...]                     # (B*C, M)   lane axis = M
    w1t = w1t_ref[...]                 # (Hd, C)
    b1 = b1_ref[...]                   # (Hd, 1)
    wt = wt_ref[...]                   # (Hd, 1)
    bt = bt_ref[...]                   # (Hd, 1)

    # First contraction (K = C = 4) on the VPU: per batch, unrolled
    # outer-product FMAs of a lane-broadcast (Hd,1) column against a
    # sublane-broadcast (1,M) row.  Sigma embedding fused into the bias.
    hs = []
    for b in range(B):
        sigma = sig_ref[b]                                   # SMEM scalar
        t = _silu(sigma * wt + bt)                           # (Hd, 1)
        acc = b1 + t                                         # (Hd, 1)
        for c in range(C):
            row = b * C + c
            acc = acc + w1t[:, c:c + 1] * x[row:row + 1, :]  # (Hd, M)
        hs.append(_silu(acc))
    # (B*Hd, M); 32-row pieces concatenate on full sublane-tile boundaries.
    h = jnp.concatenate(hs, axis=0)

    # Second contraction (K = B*Hd = 64), ONE MXU dot amortized over both
    # batches via the block-diagonal W2; result is already in packed
    # (B*C, M) layout.
    mo = jnp.dot(w2bd_ref[...], h, preferred_element_type=jnp.float32)
    mo = mo + b2_ref[...]                                    # (B*C, M)

    # ConsistencyModel.forward: c_skip * x + c_out * model(x, sigma)
    # Single full-vreg, lane-dense, unmasked (8, M) store.
    o_ref[...] = csk_ref[...] * x + cot_ref[...] * mo


def prepare_params(params, batch):
    """Kernel-layout weights; call ONCE outside jit (concrete arrays)."""
    w1, b1, wt, bt, w2, b2 = params
    C, Hd = w1.shape
    w1t = jnp.asarray(w1, jnp.float32).T                     # (Hd, C)
    b1c = jnp.asarray(b1, jnp.float32).reshape(Hd, 1)        # (Hd, 1)
    wtc = jnp.asarray(wt, jnp.float32).reshape(Hd, 1)        # (Hd, 1)
    btc = jnp.asarray(bt, jnp.float32).reshape(Hd, 1)        # (Hd, 1)
    # Block-diagonal second-layer weight: one dot covers all batches and the
    # output lands directly in the packed (B*C, M) sublane layout.
    w2bd = jnp.kron(jnp.eye(batch, dtype=jnp.float32),
                    jnp.asarray(w2, jnp.float32).T)          # (B*C, B*Hd)
    b2col = jnp.tile(jnp.asarray(b2, jnp.float32).reshape(C, 1),
                     (batch, 1))                             # (B*C, 1)
    return (w1t, b1c, wtc, btc, w2bd, b2col)


def consistency_forward(x_nchw, sigma, prepped):
    """x_nchw: (B, C, H, W) f32, sigma: (B,) f32, prepped: prepare_params()."""
    w1t, b1c, wtc, btc, w2bd, b2col = prepped
    B, C, H, W = x_nchw.shape
    M = H * W
    Hd = w1t.shape[0]

    # NCHW -> (B*C, M): free reshape, batch*channel on sublanes, M on lanes.
    x = x_nchw.reshape(B * C, M).astype(jnp.float32)

    # Per-batch consistency scalings as (B*C, 1) columns (single tiny fusion).
    s = sigma.astype(jnp.float32)
    c_skip = SIGMA_DATA ** 2 / ((s - SIGMA_MIN) ** 2 + SIGMA_DATA ** 2)
    c_out = SIGMA_DATA * (s - SIGMA_MIN) / jnp.sqrt(SIGMA_DATA ** 2 + s * s)
    csk_col = jnp.repeat(c_skip, C).reshape(B * C, 1)
    cot_col = jnp.repeat(c_out, C).reshape(B * C, 1)

    out = pl.pallas_call(
        consistency_kernel,
        out_shape=jax.ShapeDtypeStruct((B * C, M), jnp.float32),
        grid=(1,),
        in_specs=[
            pl.BlockSpec((B,), lambda i: (0,),
                         memory_space=pltpu.MemorySpace.SMEM),     # sigma (1-D)
            pl.BlockSpec((Hd, C), lambda i: (0, 0)),               # w1^T
            pl.BlockSpec((Hd, 1), lambda i: (0, 0)),               # b1
            pl.BlockSpec((Hd, 1), lambda i: (0, 0)),               # wt (sigma emb)
            pl.BlockSpec((Hd, 1), lambda i: (0, 0)),               # bt
            pl.BlockSpec((B * C, B * Hd), lambda i: (0, 0)),       # block-diag W2
            pl.BlockSpec((B * C, 1), lambda i: (0, 0)),            # b2 column
            pl.BlockSpec((B * C, 1), lambda i: (0, 0)),            # c_skip column
            pl.BlockSpec((B * C, 1), lambda i: (0, 0)),            # c_out column
            pl.BlockSpec((B * C, M), lambda i: (0, 0)),            # x (lane = M)
        ],
        out_specs=pl.BlockSpec((B * C, M), lambda i: (0, 0)),      # lane-dense
    )(s, w1t, b1c, wtc, btc, w2bd, b2col, csk_col, cot_col, x)

    # (B*C, M) -> NCHW, free reshape.
    return out.reshape(B, C, H, W)


def reference_forward(x_nchw, sigma, params):
    """Pure-JAX reference matching the PyTorch ConsistencyModel semantics."""
    w1, b1, wt, bt, w2, b2 = params
    B, C, H, W = x_nchw.shape
    s = sigma.reshape(B, 1, 1, 1)                                  # pad_dims_like
    c_skip = SIGMA_DATA ** 2 / ((s - SIGMA_MIN) ** 2 + SIGMA_DATA ** 2)
    c_out = SIGMA_DATA * (s - SIGMA_MIN) / (SIGMA_DATA ** 2 + s ** 2) ** 0.5

    x_rows = jnp.transpose(x_nchw, (0, 2, 3, 1)).reshape(B, H * W, C)
    t = _silu(sigma.reshape(B, 1, 1) * wt[None] + bt[None])        # (B,1,Hd)
    h = _silu(x_rows @ w1 + b1[None] + t)
    model_out = h @ w2 + b2[None]
    model_out = jnp.transpose(model_out.reshape(B, H, W, C), (0, 3, 1, 2))
    return c_skip * x_nchw + c_out * model_out


if __name__ == "__main__":
    B, C, H, W = 2, 4, 16, 16
    HIDDEN = 32

    key = jax.random.PRNGKey(0)
    k_x, k_s, k_w1, k_b1, k_wt, k_bt, k_w2, k_b2 = jax.random.split(key, 8)

    x = jax.random.normal(k_x, (B, C, H, W), dtype=jnp.float32)
    sigma = jax.random.uniform(k_s, (B,), dtype=jnp.float32,
                               minval=0.01, maxval=2.0)

    params = (
        0.2 * jax.random.normal(k_w1, (C, HIDDEN), dtype=jnp.float32),
        0.1 * jax.random.normal(k_b1, (1, HIDDEN), dtype=jnp.float32),
        0.2 * jax.random.normal(k_wt, (1, HIDDEN), dtype=jnp.float32),
        0.1 * jax.random.normal(k_bt, (1, HIDDEN), dtype=jnp.float32),
        0.2 * jax.random.normal(k_w2, (HIDDEN, C), dtype=jnp.float32),
        0.1 * jax.random.normal(k_b2, (1, C), dtype=jnp.float32),
    )

    # Kernel-layout weights are built ONCE, outside the jitted step.
    prepped = jax.block_until_ready(prepare_params(params, B))

    fwd = jax.jit(consistency_forward)
    out = fwd(x, sigma, prepped)
    out = jax.block_until_ready(out)

    ref = reference_forward(x, sigma, params)
    assert out.shape == (B, C, H, W)
    assert jnp.allclose(out, ref, atol=1e-5, rtol=1e-5)

    print("KERNEL_OK")
</pallas_src>

<mosaic_0001>
module attributes {stable_mosaic.version = 11 : i64} {
  func.func @consistency_kernel(%arg0: i32, %arg1: memref<2xf32, #tpu.memory_space<smem>>, %arg2: memref<32x4xf32, #tpu.memory_space<vmem>>, %arg3: memref<32x1xf32, #tpu.memory_space<vmem>>, %arg4: memref<32x1xf32, #tpu.memory_space<vmem>>, %arg5: memref<32x1xf32, #tpu.memory_space<vmem>>, %arg6: memref<8x64xf32, #tpu.memory_space<vmem>>, %arg7: memref<8x1xf32, #tpu.memory_space<vmem>>, %arg8: memref<8x1xf32, #tpu.memory_space<vmem>>, %arg9: memref<8x1xf32, #tpu.memory_space<vmem>>, %arg10: memref<8x256xf32, #tpu.memory_space<vmem>>, %arg11: memref<8x256xf32, #tpu.memory_space<vmem>>) attributes {dimension_semantics = [#tpu.dimension_semantics<arbitrary>], iteration_bounds = array<i64: 1>, scalar_prefetch = 0 : i64, scratch_operands = 0 : i64, tpu.core_type = #tpu.core_type<tc>, window_params = [{transform_indices = @transform_0, window_bounds = array<i64: 2>}, {pipeline_mode = #tpu.pipeline_mode<synchronous>, transform_indices = @transform_1, window_bounds = array<i64: 32, 4>}, {pipeline_mode = #tpu.pipeline_mode<synchronous>, transform_indices = @transform_2, window_bounds = array<i64: 32, 1>}, {pipeline_mode = #tpu.pipeline_mode<synchronous>, transform_indices = @transform_3, window_bounds = array<i64: 32, 1>}, {pipeline_mode = #tpu.pipeline_mode<synchronous>, transform_indices = @transform_4, window_bounds = array<i64: 32, 1>}, {pipeline_mode = #tpu.pipeline_mode<synchronous>, transform_indices = @transform_5, window_bounds = array<i64: 8, 64>}, {pipeline_mode = #tpu.pipeline_mode<synchronous>, transform_indices = @transform_6, window_bounds = array<i64: 8, 1>}, {pipeline_mode = #tpu.pipeline_mode<synchronous>, transform_indices = @transform_7, window_bounds = array<i64: 8, 1>}, {pipeline_mode = #tpu.pipeline_mode<synchronous>, transform_indices = @transform_8, window_bounds = array<i64: 8, 1>}, {pipeline_mode = #tpu.pipeline_mode<synchronous>, transform_indices = @transform_9, window_bounds = array<i64: 8, 256>}, {pipeline_mode = #tpu.pipeline_mode<synchronous>, transform_indices = @transform_10, window_bounds = array<i64: 8, 256>}]} {
    %c0 = arith.constant 0 : index
    %c0_0 = arith.constant 0 : index
    %0 = vector.load %arg10[%c0, %c0_0] : memref<8x256xf32, #tpu.memory_space<vmem>>, vector<8x256xf32>
    %c0_1 = arith.constant 0 : index
    %c0_2 = arith.constant 0 : index
    %1 = vector.load %arg2[%c0_1, %c0_2] : memref<32x4xf32, #tpu.memory_space<vmem>>, vector<32x4xf32>
    %c0_3 = arith.constant 0 : index
    %c0_4 = arith.constant 0 : index
    %2 = vector.load %arg3[%c0_3, %c0_4] : memref<32x1xf32, #tpu.memory_space<vmem>>, vector<32x1xf32>
    %c0_5 = arith.constant 0 : index
    %c0_6 = arith.constant 0 : index
    %3 = vector.load %arg4[%c0_5, %c0_6] : memref<32x1xf32, #tpu.memory_space<vmem>>, vector<32x1xf32>
    %c0_7 = arith.constant 0 : index
    %c0_8 = arith.constant 0 : index
    %4 = vector.load %arg5[%c0_7, %c0_8] : memref<32x1xf32, #tpu.memory_space<vmem>>, vector<32x1xf32>
    %c0_9 = arith.constant 0 : index
    %5 = memref.load %arg1[%c0_9] : memref<2xf32, #tpu.memory_space<smem>>
    %6 = vector.broadcast %5 : f32 to vector<32x1xf32>
    %7 = arith.mulf %6, %3 : vector<32x1xf32>
    %8 = arith.addf %7, %4 : vector<32x1xf32>
    %9 = arith.negf %8 : vector<32x1xf32>
    %10 = math.exp %9 : vector<32x1xf32>
    %cst = arith.constant 1.000000e+00 : f32
    %11 = vector.broadcast %cst : f32 to vector<32x1xf32>
    %12 = arith.addf %11, %10 : vector<32x1xf32>
    %13 = arith.divf %11, %12 : vector<32x1xf32>
    %14 = arith.mulf %8, %13 : vector<32x1xf32>
    %15 = arith.addf %2, %14 : vector<32x1xf32>
    %16 = vector.extract_strided_slice %1 {offsets = [0, 0], sizes = [32, 1], strides = [1, 1]} : vector<32x4xf32> to vector<32x1xf32>
    %17 = vector.extract_strided_slice %0 {offsets = [0, 0], sizes = [1, 256], strides = [1, 1]} : vector<8x256xf32> to vector<1x256xf32>
    %18 = vector.broadcast %16 : vector<32x1xf32> to vector<32x256xf32>
    %19 = vector.broadcast %17 : vector<1x256xf32> to vector<32x256xf32>
    %20 = arith.mulf %18, %19 : vector<32x256xf32>
    %21 = vector.broadcast %15 : vector<32x1xf32> to vector<32x256xf32>
    %22 = arith.addf %21, %20 : vector<32x256xf32>
    %23 = vector.extract_strided_slice %1 {offsets = [0, 1], sizes = [32, 1], strides = [1, 1]} : vector<32x4xf32> to vector<32x1xf32>
    %24 = vector.extract_strided_slice %0 {offsets = [1, 0], sizes = [1, 256], strides = [1, 1]} : vector<8x256xf32> to vector<1x256xf32>
    %25 = vector.broadcast %23 : vector<32x1xf32> to vector<32x256xf32>
    %26 = vector.broadcast %24 : vector<1x256xf32> to vector<32x256xf32>
    %27 = arith.mulf %25, %26 : vector<32x256xf32>
    %28 = arith.addf %22, %27 : vector<32x256xf32>
    %29 = vector.extract_strided_slice %1 {offsets = [0, 2], sizes = [32, 1], strides = [1, 1]} : vector<32x4xf32> to vector<32x1xf32>
    %30 = vector.extract_strided_slice %0 {offsets = [2, 0], sizes = [1, 256], strides = [1, 1]} : vector<8x256xf32> to vector<1x256xf32>
    %31 = vector.broadcast %29 : vector<32x1xf32> to vector<32x256xf32>
    %32 = vector.broadcast %30 : vector<1x256xf32> to vector<32x256xf32>
    %33 = arith.mulf %31, %32 : vector<32x256xf32>
    %34 = arith.addf %28, %33 : vector<32x256xf32>
    %35 = vector.extract_strided_slice %1 {offsets = [0, 3], sizes = [32, 1], strides = [1, 1]} : vector<32x4xf32> to vector<32x1xf32>
    %36 = vector.extract_strided_slice %0 {offsets = [3, 0], sizes = [1, 256], strides = [1, 1]} : vector<8x256xf32> to vector<1x256xf32>
    %37 = vector.broadcast %35 : vector<32x1xf32> to vector<32x256xf32>
    %38 = vector.broadcast %36 : vector<1x256xf32> to vector<32x256xf32>
    %39 = arith.mulf %37, %38 : vector<32x256xf32>
    %40 = arith.addf %34, %39 : vector<32x256xf32>
    %41 = arith.negf %40 : vector<32x256xf32>
    %42 = math.exp %41 : vector<32x256xf32>
    %cst_10 = arith.constant 1.000000e+00 : f32
    %43 = vector.broadcast %cst_10 : f32 to vector<32x256xf32>
    %44 = arith.addf %43, %42 : vector<32x256xf32>
    %45 = arith.divf %43, %44 : vector<32x256xf32>
    %46 = arith.mulf %40, %45 : vector<32x256xf32>
    %c1 = arith.constant 1 : index
    %47 = memref.load %arg1[%c1] : memref<2xf32, #tpu.memory_space<smem>>
    %48 = vector.broadcast %47 : f32 to vector<32x1xf32>
    %49 = arith.mulf %48, %3 : vector<32x1xf32>
    %50 = arith.addf %49, %4 : vector<32x1xf32>
    %51 = arith.negf %50 : vector<32x1xf32>
    %52 = math.exp %51 : vector<32x1xf32>
    %cst_11 = arith.constant 1.000000e+00 : f32
    %53 = vector.broadcast %cst_11 : f32 to vector<32x1xf32>
    %54 = arith.addf %53, %52 : vector<32x1xf32>
    %55 = arith.divf %53, %54 : vector<32x1xf32>
    %56 = arith.mulf %50, %55 : vector<32x1xf32>
    %57 = arith.addf %2, %56 : vector<32x1xf32>
    %58 = vector.extract_strided_slice %1 {offsets = [0, 0], sizes = [32, 1], strides = [1, 1]} : vector<32x4xf32> to vector<32x1xf32>
    %59 = vector.extract_strided_slice %0 {offsets = [4, 0], sizes = [1, 256], strides = [1, 1]} : vector<8x256xf32> to vector<1x256xf32>
    %60 = vector.broadcast %58 : vector<32x1xf32> to vector<32x256xf32>
    %61 = vector.broadcast %59 : vector<1x256xf32> to vector<32x256xf32>
    %62 = arith.mulf %60, %61 : vector<32x256xf32>
    %63 = vector.broadcast %57 : vector<32x1xf32> to vector<32x256xf32>
    %64 = arith.addf %63, %62 : vector<32x256xf32>
    %65 = vector.extract_strided_slice %1 {offsets = [0, 1], sizes = [32, 1], strides = [1, 1]} : vector<32x4xf32> to vector<32x1xf32>
    %66 = vector.extract_strided_slice %0 {offsets = [5, 0], sizes = [1, 256], strides = [1, 1]} : vector<8x256xf32> to vector<1x256xf32>
    %67 = vector.broadcast %65 : vector<32x1xf32> to vector<32x256xf32>
    %68 = vector.broadcast %66 : vector<1x256xf32> to vector<32x256xf32>
    %69 = arith.mulf %67, %68 : vector<32x256xf32>
    %70 = arith.addf %64, %69 : vector<32x256xf32>
    %71 = vector.extract_strided_slice %1 {offsets = [0, 2], sizes = [32, 1], strides = [1, 1]} : vector<32x4xf32> to vector<32x1xf32>
    %72 = vector.extract_strided_slice %0 {offsets = [6, 0], sizes = [1, 256], strides = [1, 1]} : vector<8x256xf32> to vector<1x256xf32>
    %73 = vector.broadcast %71 : vector<32x1xf32> to vector<32x256xf32>
    %74 = vector.broadcast %72 : vector<1x256xf32> to vector<32x256xf32>
    %75 = arith.mulf %73, %74 : vector<32x256xf32>
    %76 = arith.addf %70, %75 : vector<32x256xf32>
    %77 = vector.extract_strided_slice %1 {offsets = [0, 3], sizes = [32, 1], strides = [1, 1]} : vector<32x4xf32> to vector<32x1xf32>
    %78 = vector.extract_strided_slice %0 {offsets = [7, 0], sizes = [1, 256], strides = [1, 1]} : vector<8x256xf32> to vector<1x256xf32>
    %79 = vector.broadcast %77 : vector<32x1xf32> to vector<32x256xf32>
    %80 = vector.broadcast %78 : vector<1x256xf32> to vector<32x256xf32>
    %81 = arith.mulf %79, %80 : vector<32x256xf32>
    %82 = arith.addf %76, %81 : vector<32x256xf32>
    %83 = arith.negf %82 : vector<32x256xf32>
    %84 = math.exp %83 : vector<32x256xf32>
    %cst_12 = arith.constant 1.000000e+00 : f32
    %85 = vector.broadcast %cst_12 : f32 to vector<32x256xf32>
    %86 = arith.addf %85, %84 : vector<32x256xf32>
    %87 = arith.divf %85, %86 : vector<32x256xf32>
    %88 = arith.mulf %82, %87 : vector<32x256xf32>
    %89 = tpu.concatenate %46, %88 in 0 : vector<32x256xf32>, vector<32x256xf32> -> vector<64x256xf32>
    %c0_13 = arith.constant 0 : index
    %c0_14 = arith.constant 0 : index
    %90 = vector.load %arg6[%c0_13, %c0_14] : memref<8x64xf32, #tpu.memory_space<vmem>>, vector<8x64xf32>
    %cst_15 = arith.constant dense<0.000000e+00> : vector<8x256xf32>
    %91 = tpu.matmul %90, %89, %cst_15 {dimension_numbers = #tpu.dot_dimension_numbers<[1], [0], [0], [1], [0, 0, 1, 1], [], []>} : vector<8x64xf32>, vector<64x256xf32>, vector<8x256xf32> -> vector<8x256xf32>
    %c0_16 = arith.constant 0 : index
    %c0_17 = arith.constant 0 : index
    %92 = vector.load %arg7[%c0_16, %c0_17] : memref<8x1xf32, #tpu.memory_space<vmem>>, vector<8x1xf32>
    %93 = vector.broadcast %92 : vector<8x1xf32> to vector<8x256xf32>
    %94 = arith.addf %91, %93 : vector<8x256xf32>
    %c0_18 = arith.constant 0 : index
    %c0_19 = arith.constant 0 : index
    %95 = vector.load %arg8[%c0_18, %c0_19] : memref<8x1xf32, #tpu.memory_space<vmem>>, vector<8x1xf32>
    %96 = vector.broadcast %95 : vector<8x1xf32> to vector<8x256xf32>
    %97 = arith.mulf %96, %0 : vector<8x256xf32>
    %c0_20 = arith.constant 0 : index
    %c0_21 = arith.constant 0 : index
    %98 = vector.load %arg9[%c0_20, %c0_21] : memref<8x1xf32, #tpu.memory_space<vmem>>, vector<8x1xf32>
    %99 = vector.broadcast %98 : vector<8x1xf32> to vector<8x256xf32>
    %100 = arith.mulf %99, %94 : vector<8x256xf32>
    %101 = arith.addf %97, %100 : vector<8x256xf32>
    %c0_22 = arith.constant 0 : index
    %c0_23 = arith.constant 0 : index
    %102 = vector.load %arg11[%c0_22, %c0_23] : memref<8x256xf32, #tpu.memory_space<vmem>>, vector<8x256xf32>
    tpu.vector_store %arg11[%c0_22, %c0_23], %101 {strides = array<i32>} : memref<8x256xf32, #tpu.memory_space<vmem>>, vector<8x256xf32>,
    return
  }
  func.func @transform_0(%arg0: i32) -> i32 {
    %c0_i32 = arith.constant 0 : i32
    %c0_i32_0 = arith.constant 0 : i32
    return %c0_i32 : i32
  }
  func.func @transform_1(%arg0: i32) -> (i32, i32) {
    %c0_i32 = arith.constant 0 : i32
    %c0_i32_0 = arith.constant 0 : i32
    %c0_i32_1 = arith.constant 0 : i32
    return %c0_i32, %c0_i32_0 : i32, i32
  }
  func.func @transform_2(%arg0: i32) -> (i32, i32) {
    %c0_i32 = arith.constant 0 : i32
    %c0_i32_0 = arith.constant 0 : i32
    %c0_i32_1 = arith.constant 0 : i32
    return %c0_i32, %c0_i32_0 : i32, i32
  }
  func.func @transform_3(%arg0: i32) -> (i32, i32) {
    %c0_i32 = arith.constant 0 : i32
    %c0_i32_0 = arith.constant 0 : i32
    %c0_i32_1 = arith.constant 0 : i32
    return %c0_i32, %c0_i32_0 : i32, i32
  }
  func.func @transform_4(%arg0: i32) -> (i32, i32) {
    %c0_i32 = arith.constant 0 : i32
    %c0_i32_0 = arith.constant 0 : i32
    %c0_i32_1 = arith.constant 0 : i32
    return %c0_i32, %c0_i32_0 : i32, i32
  }
  func.func @transform_5(%arg0: i32) -> (i32, i32) {
    %c0_i32 = arith.constant 0 : i32
    %c0_i32_0 = arith.constant 0 : i32
    %c0_i32_1 = arith.constant 0 : i32
    return %c0_i32, %c0_i32_0 : i32, i32
  }
  func.func @transform_6(%arg0: i32) -> (i32, i32) {
    %c0_i32 = arith.constant 0 : i32
    %c0_i32_0 = arith.constant 0 : i32
    %c0_i32_1 = arith.constant 0 : i32
    return %c0_i32, %c0_i32_0 : i32, i32
  }
  func.func @transform_7(%arg0: i32) -> (i32, i32) {
    %c0_i32 = arith.constant 0 : i32
    %c0_i32_0 = arith.constant 0 : i32
    %c0_i32_1 = arith.constant 0 : i32
    return %c0_i32, %c0_i32_0 : i32, i32
  }
  func.func @transform_8(%arg0: i32) -> (i32, i32) {
    %c0_i32 = arith.constant 0 : i32
    %c0_i32_0 = arith.constant 0 : i32
    %c0_i32_1 = arith.constant 0 : i32
    return %c0_i32, %c0_i32_0 : i32, i32
  }
  func.func @transform_9(%arg0: i32) -> (i32, i32) {
    %c0_i32 = arith.constant 0 : i32
    %c0_i32_0 = arith.constant 0 : i32
    %c0_i32_1 = arith.constant 0 : i32
    return %c0_i32, %c0_i32_0 : i32, i32
  }
  func.func @transform_10(%arg0: i32) -> (i32, i32) {
    %c0_i32 = arith.constant 0 : i32
    %c0_i32_0 = arith.constant 0 : i32
    %c0_i32_1 = arith.constant 0 : i32
    return %c0_i32, %c0_i32_0 : i32, i32
  }
}

</mosaic_0001>

<bundles_post_ra>
// kernel: consistency_forward.1
= control target key start
LH: loop header
LB: loop body
LE: loop exit
PB: predicated region body
PF: predicated region fallthrough
CT: control target
= control target key end

     0   :  { %15 = vsyncpa [#allocation3], 0  ;;  %s1061_s16 = smov [#allocation2]   ;;  %s1949_s0 = inlined_call_operand.vmem [shape: f32[2], index: 0, kind: input, shape index: {}]   ;;  %s1950_s1 = inlined_call_operand.vmem [shape: f32[32,4], index: 1, kind: input, shape index: {}]   ;;  %s1951_s2 = inlined_call_operand.vmem [shape: f32[32,1], index: 2, kind: input, shape index: {}]   ;;  %s1952_s3 = inlined_call_operand.vmem [shape: f32[32,1], index: 3, kind: input, shape index: {}]   ;;  %s1953_s4 = inlined_call_operand.vmem [shape: f32[32,1], index: 4, kind: input, shape index: {}]   ;;  %s1954_s5 = inlined_call_operand.vmem [shape: f32[8,64], index: 5, kind: input, shape index: {}]   ;;  %s1955_s6 = inlined_call_operand.vmem [shape: f32[8,1], index: 6, kind: input, shape index: {}]   ;;  %s1956_s7 = inlined_call_operand.vmem [shape: f32[8,1], index: 7, kind: input, shape index: {}]   ;;  %s1957_s8 = inlined_call_operand.vmem [shape: f32[8,1], index: 8, kind: input, shape index: {}]   ;;  %s1958_s9 = inlined_call_operand.vmem [shape: f32[8,256], index: 9, kind: input, shape index: {}]   ;;  %s1959_s10 = inlined_call_operand.vmem [shape: f32[8,256], index: 10, kind: output, shape index: {}]  }
   0x1   :  { %s21_s15 = sshll.u32 %s1949_s0, 4  ;;  %s22_s15 = int_to_ptr.vmem [resolvable:$true] %s21_s15 }
   0x2   :  { %24 = dma.vmem_to_smem %s22_s15, 16, %s1061_s16, [#allocation3]  }
   0x3   :  { %1059 = dma.done.wait [#allocation3], 16  }
   0x4   :  { %1060 = vsyncadd [#allocation3], 4294967280 }
   0x5   :  { %47 = sfence }
   0x6   :  { %v1127_v0 = vld [vmem:[%s1950_s1 + $0x8] sm:$0xff]  ;;  %v1132_v1 = vld [vmem:[%s1950_s1 + $0x18] sm:$0xff]  ;;  %v1062_v2 = vmov 0   ;;  %v1063_v3 = vmov 1   ;;  %s914_s0 = sld [smem:[#allocation2 + $0x1]]  ;;  %v1064_v4 = vmov 2  }
   0x7   :  { %935 = vset.pattern.permute.xlu2 %v1062_v2  ;;  %934 = vset.pattern.permute.xlu1 %v1063_v3  ;;  %s66_s21 = sld [smem:[#allocation2]]  ;;  %v58_v5 = vld [vmem:[%s1952_s3] sm:$0xff]  ;;  %v61_v6 = vld [vmem:[%s1952_s3 + $0x18] sm:$0xff]  ;;  %v60_v7 = vld [vmem:[%s1952_s3 + $0x10] sm:$0xff] }
   0x8   :  { %167 = vperm.xlu2 %935, %v1127_v0   ;;  %231 = vperm.xlu1 %934, %v1132_v1   ;;  %v59_v8 = vld [vmem:[%s1952_s3 + $0x8] sm:$0xff]  ;;  %v62_v9 = vld [vmem:[%s1953_s4] sm:$0xff]  ;;  %v65_v11 = vld [vmem:[%s1953_s4 + $0x18] sm:$0xff] }
   0x9   :  { %937 = vset.pattern.permute.xlu0 %v1064_v4  ;;  %v64_v12 = vld [vmem:[%s1953_s4 + $0x10] sm:$0xff]  ;;  %v1169_v17 = vld [vmem:[%s1953_s4 + $0x8] sm:$0xff]  ;;  %v1198_v35 = vld [vmem:[%s1950_s1] sm:$0xff] }
   0xa   :  { %265 = vperm.xlu0 %937, %v1132_v1   ;;  %v1164_v13 = vld [vmem:[%s1950_s1 + $0x10] sm:$0xff] }
   0xc   :  { %v481_v10 = vstv %s914_s0 }
   0xd   :  { %v482_v14 = vmul.f32 %v481_v10, %v58_v5  ;;  %v485_v15 = vmul.f32 %v481_v10, %v61_v6  ;;  %v484_v16 = vmul.f32 %v481_v10, %v60_v7  ;;  %v483_v18 = vmul.f32 %v481_v10, %v59_v8 }
   0xe   :  { %v67_v19 = vstv %s66_s21 }
   0xf   :  { %v1173_v20 = vadd.f32 %v482_v14, %v62_v9  ;;  %v1175_v21 = vadd.f32 %v485_v15, %v65_v11  ;;  %v1177_v22 = vadd.f32 %v484_v16, %v64_v12  ;;  %v1181_v23 = vadd.f32 %v483_v18, %v1169_v17 }
  0x10   :  { %936 = vset.pattern.permute.xlu2 %v1063_v3  ;;  %223 = vperm.xlu1 %934, %v1127_v0   ;;  %v70_v24 = vmul.f32 %v67_v19, %v60_v7  ;;  %v71_v25 = vmul.f32 %v67_v19, %v61_v6  ;;  %v68_v32 = vmul.f32 %v67_v19, %v58_v5 }
  0x11   :  { %227 = vperm.xlu2 %936, %v1164_v13   ;;  %v915_v26 = vmul.f32 -1.442695, %v1173_v20  ;;  %v918_v27 = vmul.f32 -1.442695, %v1175_v21  ;;  %v917_v28 = vmul.f32 -1.442695, %v1177_v22  ;;  %v69_v49 = vmul.f32 %v67_v19, %v59_v8 }
  0x12   :  { %938 = vset.pattern.permute.xlu0 %v1062_v2  ;;  %v916_v29 = vmul.f32 -1.442695, %v1181_v23  ;;  %v1189_v30 = vadd.f32 %v70_v24, %v64_v12  ;;  %v1191_v31 = vadd.f32 %v71_v25, %v65_v11  ;;  %v1201_v36 = vadd.f32 %v68_v32, %v62_v9 }
  0x13   :  { %177 = vperm.xlu0 %938, %v1132_v1   ;;  %951 = vpow2.f32 %v915_v26  ;;  %v1223_v58 = vadd.f32 %v69_v49, %v1169_v17  ;;  %v1290_v49 = vld [vmem:[%s1951_s2 + $0x18] sm:$0xff] }
  0x14   :  { %953 = vpow2.f32 %v918_v27  ;;  %v904_v33 = vmul.f32 -1.442695, %v1189_v30  ;;  %v905_v34 = vmul.f32 -1.442695, %v1191_v31  ;;  %v902_v42 = vmul.f32 -1.442695, %v1201_v36 }
  0x15   :  { %955 = vpow2.f32 %v917_v28 }
  0x16   :  { %957 = vpow2.f32 %v916_v29 }
  0x17   :  { %959 = vpow2.f32 %v904_v33 }
  0x18   :  { %942 = vset.pattern.permute.xlu1 %v1064_v4  ;;  %961 = vpow2.f32 %v905_v34 }
  0x19   :  { %939 = vset.pattern.permute.xlu2 %v1062_v2  ;;  %257 = vperm.xlu1 %942, %v1127_v0   ;;  %v952_v37 = vpop.eup %951 }
  0x1a   :  { %162 = vperm.xlu2 %939, %v1198_v35   ;;  %v954_v38 = vpop.eup %953  ;;  %v502_v39 = vadd.f32 1.0, %v952_v37 }
  0x1b   :  { %172 = vperm.xlu0 %938, %v1164_v13   ;;  %v956_v40 = vpop.eup %955  ;;  %v505_v41 = vadd.f32 1.0, %v954_v38 }
  0x1c   :  { %v958_v43 = vpop.eup %957  ;;  %963 = vrcp.f32 %v502_v39  ;;  %v1208_v46 = vadd.f32 1.0, %v956_v40  ;;  %v515_v50 = vand.u32 2147483647, %v502_v39  ;;  %v517_v51 = vand.u32 2147483648, %v502_v39 }
  0x1d   :  { %v960_v44 = vpop.eup %959  ;;  %965 = vrcp.f32 %v505_v41  ;;  %v1210_v47 = vadd.f32 1.0, %v958_v43  ;;  %v560_v54 = vand.u32 2147483647, %v505_v41  ;;  %v562_v57 = vand.u32 2147483648, %v505_v41 }
  0x1e   :  { %v962_v45 = vpop.eup %961  ;;  %v1212_v48 = vadd.f32 1.0, %v960_v44  ;;  %967 = vpow2.f32 %v902_v42  ;;  %vm511_vm0 = vweird.f32 %v502_v39  ;;  %vm1225_vm1 = vcmp.eq.f32.partialorder %v515_v50, 8.507059e+37 }
  0x1f   :  { %969 = vrcp.f32 %v1208_v46  ;;  %v1218_v52 = vadd.f32 1.0, %v962_v45  ;;  %vm556_vm2 = vweird.f32 %v505_v41  ;;  %v518_v63 = vor.u32 1.1754944e-38, %v517_v51 }
  0x20   :  { %971 = vrcp.f32 %v1210_v47  ;;  %vm1230_vm5 = vcmp.eq.f32.partialorder %v560_v54, 8.507059e+37  ;;  %v547_v8 = vand.u32 2147483648, %v1208_v46  ;;  %v563_v11 = vor.u32 1.1754944e-38, %v562_v57 }
  0x21   :  { %944 = vset.pattern.permute.xlu1 %v1062_v2  ;;  %973 = vrcp.f32 %v1212_v48  ;;  %vm541_vm6 = vweird.f32 %v1208_v46  ;;  %v545_v17 = vand.u32 2147483647, %v1208_v46  ;;  %vm526_vm8 = vweird.f32 %v1210_v47 }
  0x22   :  { %940 = vset.pattern.permute.xlu2 %v1064_v4  ;;  %v964_v53 = vpop.eup %963  ;;  %975 = vrcp.f32 %v1218_v52  ;;  %v548_v28 = vor.u32 1.1754944e-38, %v547_v8  ;;  %v530_v32 = vand.u32 2147483647, %v1210_v47  ;;  %v903_v54 = vmul.f32 -1.442695, %v1223_v58 }
  0x23   :  { %261 = vperm.xlu2 %940, %v1164_v13   ;;  %v966_v55 = vpop.eup %965  ;;  %v507_v56 = vmul.f32 %v964_v53, %v502_v39  ;;  %vm512_vm3 = vweird.f32 %v964_v53  ;;  %vm546_vm12 = vcmp.eq.f32.partialorder %v545_v17, 8.507059e+37  ;;  %vm127_vm15 = vweird.f32 %v1212_v48 }
  0x24   :  { %v552_v60 = vmul.f32 %v966_v55, %v505_v41  ;;  %v968_v61 = vpop.eup %967  ;;  %vm557_vm4 = vweird.f32 %v966_v55  ;;  %vm1242_vm7 = vmor %vm511_vm0, %vm512_vm3  ;;  %v131_v8 = vand.u32 2147483647, %v1212_v48  ;;  %vm142_vm3 = vweird.f32 %v1218_v52 }
  0x25   :  { %v508_v62 = vsub.f32 1.0, %v507_v56  ;;  %v970_v5 = vpop.eup %969  ;;  %vm1252_vm9 = vmor %vm556_vm2, %vm557_vm4  ;;  %v1265_v39 = vadd.f32 1.0, %v968_v61  ;;  %v146_v17 = vand.u32 2147483647, %v1218_v52 }
  0x26   :  { %v553_v6 = vsub.f32 1.0, %v552_v60  ;;  %v1235_v9 = vpop.eup %971  ;;  %v537_v12 = vmul.f32 %v970_v5, %v1208_v46  ;;  %vm542_vm10 = vweird.f32 %v970_v5 }
  0x27   :  { %v509_v10 = vmul.f32 %v964_v53, %v508_v62  ;;  %v1239_v14 = vpop.eup %973  ;;  %v522_v18 = vmul.f32 %v1235_v9, %v1210_v47  ;;  %vm1279_vm11 = vmor %vm541_vm6, %vm542_vm10  ;;  %vm527_vm13 = vweird.f32 %v1235_v9  ;;  %977 = vrcp.f32 %v1265_v39 }
  0x28   :  { %v554_v16 = vmul.f32 %v966_v55, %v553_v6  ;;  %v538_v25 = vsub.f32 1.0, %v537_v12  ;;  %v123_v26 = vmul.f32 %v1239_v14, %v1212_v48  ;;  %v1260_v33 = vpop.eup %975  ;;  %vm1307_vm14 = vmor %vm526_vm8, %vm527_vm13  ;;  %vm128_vm0 = vweird.f32 %v1239_v14 }
  0x29   :  { %v510_v19 = vadd.f32 %v964_v53, %v509_v10  ;;  %v523_v29 = vsub.f32 1.0, %v522_v18  ;;  %v138_v44 = vmul.f32 %v1260_v33, %v1218_v52  ;;  %v133_v6 = vand.u32 2147483648, %v1212_v48  ;;  %vm1328_vm2 = vmor %vm127_vm15, %vm128_vm0 }
  0x2a   :  { %v555_v27 = vadd.f32 %v966_v55, %v554_v16  ;;  %v539_v37 = vmul.f32 %v970_v5, %v538_v25  ;;  %v124_v38 = vsub.f32 1.0, %v123_v26  ;;  %979 = vpow2.f32 %v903_v54 }
  0x2b   :  { %941 = vset.pattern.permute.xlu2 %v1063_v3  ;;  %v514_v34 = vsel %vm1242_vm7, %v964_v53, %v510_v19  ;;  %v1270_v3 = vld [vmem:[%s1951_s2] sm:$0xff]  ;;  %v524_v43 = vmul.f32 %v1235_v9, %v523_v29  ;;  %v532_v53 = vand.u32 2147483648, %v1210_v47  ;;  %v139_v60 = vsub.f32 1.0, %v138_v44 }
  0x2c   :  { %219 = vperm.xlu2 %941, %v1198_v35   ;;  %v519_v40 = vsel %vm1225_vm1, %v518_v63, %v514_v34  ;;  %v559_v41 = vsel %vm1252_vm9, %v966_v55, %v555_v27  ;;  %v540_v46 = vadd.f32 %v970_v5, %v539_v37  ;;  %v125_v56 = vmul.f32 %v1239_v14, %v124_v38 }
  0x2d   :  { %v566_v45 = vmul.f32 %v519_v40, %v1173_v20  ;;  %v564_v50 = vsel %vm1230_vm5, %v563_v11, %v559_v41  ;;  %v1065_v63 = vmov 3   ;;  %vm531_vm1 = vcmp.eq.f32.partialorder %v530_v32, 8.507059e+37  ;;  %v978_v11 = vpop.eup %977 }
  0x2e   :  { %v569_v51 = vmul.f32 %v564_v50, %v1175_v21  ;;  %v544_v55 = vsel %vm1279_vm11, %v970_v5, %v540_v46  ;;  %v525_v21 = vadd.f32 %v1235_v9, %v524_v43  ;;  %v56_v5 = vld [vmem:[%s1951_s2 + $0x10] sm:$0xff]  ;;  %v533_v47 = vor.u32 1.1754944e-38, %v532_v53 }
  0x2f   :  { %v570_v20 = vadd.f32 %v566_v45, %v1270_v3  ;;  %v549_v59 = vsel %vm546_vm12, %v548_v28, %v544_v55  ;;  %v126_v7 = vadd.f32 %v1239_v14, %v125_v56  ;;  %v140_v10 = vmul.f32 %v1260_v33, %v139_v60  ;;  %v55_v28 = vld [vmem:[%s1951_s2 + $0x8] sm:$0xff] }
  0x30   :  { %v573_v57 = vadd.f32 %v569_v51, %v1290_v49  ;;  %v568_v62 = vmul.f32 %v549_v59, %v1177_v22  ;;  %v529_v22 = vsel %vm1307_vm14, %v1235_v9, %v525_v21  ;;  %vm143_vm4 = vweird.f32 %v1260_v33  ;;  %v980_v25 = vpop.eup %979 }
  0x31   :  { %586 = vperm.xlu0 %938, %v570_v20   ;;  %v534_v9 = vsel %vm531_vm1, %v533_v47, %v529_v22  ;;  %v134_v16 = vor.u32 1.1754944e-38, %v133_v6  ;;  %v148_v18 = vand.u32 2147483648, %v1218_v52  ;;  %v130_v48 = vsel %vm1328_vm2, %v1239_v14, %v126_v7  ;;  %vm1342_vm6 = vmor %vm142_vm3, %vm143_vm4  ;;  %v1398_v6 = vld [vmem:[%s1958_s9] sm:$0xff] }
  0x32   :  { %601 = vperm.xlu1 %944, %v573_v57   ;;  %v572_v15 = vadd.f32 %v568_v62, %v56_v5  ;;  %vm132_vm5 = vcmp.eq.f32.partialorder %v131_v8, 8.507059e+37  ;;  %v141_v19 = vadd.f32 %v1260_v33, %v140_v10  ;;  %vm97_vm7 = vweird.f32 %v1265_v39  ;;  %v827_v57 = vld [vmem:[%s1955_s6] sm:$0xff]  ;;  %1980 = vst [vmem:[#allocation5_spill] sm:$0xff] %v1398_v6  ;;  %v1408_v10 = vld [vmem:[%s1958_s9 + $0x8] sm:$0xff] }
  0x33   :  { %v567_v52 = vmul.f32 %v534_v9, %v1181_v23  ;;  %vm98_vm8 = vweird.f32 %v978_v11  ;;  %v89_v14 = vadd.f32 1.0, %v980_v25  ;;  %v135_v29 = vsel %vm132_vm5, %v134_v16, %v130_v48  ;;  %1981 = vst [vmem:[#allocation6_spill] sm:$0xff] %v1408_v10 }
  0x34   :  { %943 = vset.pattern.permute.xlu2 %v1065_v63  ;;  %vm147_vm9 = vcmp.eq.f32.partialorder %v146_v17, 8.507059e+37  ;;  %v149_v32 = vor.u32 1.1754944e-38, %v148_v18  ;;  %v103_v34 = vand.u32 2147483648, %v1265_v39  ;;  %v101_v23 = vand.u32 2147483647, %v1265_v39  ;;  %vm99_vm10 = vmor %vm97_vm7, %vm98_vm8 }
  0x35   :  { %295 = vperm.xlu2 %943, %v1164_v13   ;;  %v93_v13 = vmul.f32 %v978_v11, %v1265_v39  ;;  %981 = vrcp.f32 %v89_v14  ;;  %v571_v38 = vadd.f32 %v567_v52, %v55_v28  ;;  %v154_v40 = vmul.f32 %v135_v29, %v1189_v30 }
  0x36   :  { %v104_v42 = vor.u32 1.1754944e-38, %v103_v34  ;;  %vm102_vm11 = vcmp.eq.f32.partialorder %v101_v23, 8.507059e+37  ;;  %vm112_vm12 = vweird.f32 %v89_v14  ;;  %v118_v53 = vand.u32 2147483648, %v89_v14 }
  0x37   :  { %v94_v24 = vsub.f32 1.0, %v93_v13  ;;  %v116_v20 = vand.u32 2147483647, %v89_v14  ;;  %v1403_v8 = vperm.slane %v1398_v6, 0  ;;  %v1412_v12 = vperm.slane %v1398_v6, 1 }
  0x38   :  { %v575_v13 = vperm.slane %v1408_v10, 4  ;;  %v1417_v9 = vperm.slane %v1398_v6, 2  ;;  %v1420_v16 = vperm.slane %v1408_v10, 2  ;;  %v1423_v17 = vperm.slane %v1398_v6, 6 }
  0x39   :  { %945 = vset.pattern.permute.xlu0 %v1065_v63  ;;  %v95_v27 = vmul.f32 %v978_v11, %v94_v24  ;;  %vm117_vm15 = vcmp.eq.f32.partialorder %v116_v20, 8.507059e+37  ;;  %v1426_v48 = vperm.slane %v1408_v10, 0  ;;  %v1443_v29 = vperm.slane %v1408_v10, 6 }
  0x3a   :  { %596 = vperm.xlu1 %944, %v572_v15   ;;  %299 = vperm.xlu0 %945, %v1132_v1   ;;  %v145_v1 = vsel %vm1342_vm6, %v1260_v33, %v141_v19  ;;  %v158_v33 = vadd.f32 %v154_v40, %v56_v5  ;;  %v574_v15 = vperm.slane %v1398_v6, 4 }
  0x3b   :  { %v96_v37 = vadd.f32 %v978_v11, %v95_v27  ;;  %v150_v41 = vsel %vm147_vm9, %v149_v32, %v145_v1  ;;  %v1434_v27 = vperm.slane %v1398_v6, 5  ;;  %v1446_v32 = vperm.slane %v1408_v10, 1 }
  0x3c   :  { %v155_v44 = vmul.f32 %v150_v41, %v1191_v31  ;;  %v119_v31 = vor.u32 1.1754944e-38, %v118_v53 }
  0x3d   :  { %946 = vset.pattern.permute.xlu2 %v1064_v4  ;;  %v100_v43 = vsel %vm99_vm10, %v978_v11, %v96_v37  ;;  %v982_v4 = vpop.eup %981 }
  0x3e   :  { %253 = vperm.xlu2 %946, %v1198_v35   ;;  %v105_v45 = vsel %vm102_vm11, %v104_v42, %v100_v43  ;;  %v108_v50 = vmul.f32 %v982_v4, %v89_v14  ;;  %v159_v46 = vadd.f32 %v155_v44, %v1290_v49  ;;  %vm113_vm13 = vweird.f32 %v982_v4 }
  0x3f   :  { %v152_v30 = vmul.f32 %v105_v45, %v1201_v36  ;;  %vm114_vm14 = vmor %vm112_vm12, %vm113_vm13  ;;  %v877_v36 = vld [vmem:[%s1956_s7] sm:$0xff]  ;;  %v1437_v14 = vperm.slane %v1408_v10, 5 }
  0x40   :  { %v109_v39 = vsub.f32 1.0, %v108_v50 }
  0x42   :  { %591 = vperm.xlu1 %944, %v571_v38   ;;  %287 = vperm.xlu0 %945, %v1198_v35   ;;  %v110_v51 = vmul.f32 %v982_v4, %v109_v39  ;;  %v156_v35 = vadd.f32 %v152_v30, %v1270_v3 }
  0x44   :  { %v111_v54 = vadd.f32 %v982_v4, %v110_v51 }
  0x46   :  { %948 = vset.pattern.permute.xlu2 %v1062_v2  ;;  %v115_v55 = vsel %vm114_vm14, %v982_v4, %v111_v54 }
  0x47   :  { %202 = vperm.xlu2 %948, %v158_v33   ;;  %v120_v56 = vsel %vm117_vm15, %v119_v31, %v115_v55 }
  0x48   :  { %v153_v3 = vmul.f32 %v120_v56, %v1223_v58 }
  0x4a   :  { %207 = vperm.xlu1 %944, %v159_v46   ;;  %950 = vset.pattern.permute.xlu0 %v1062_v2  ;;  %v157_v49 = vadd.f32 %v153_v3, %v55_v28  ;;  %v1440_v28 = vperm.slane %v1398_v6, 3  ;;  %v1477_v3 = vperm.slane %v1398_v6, 7 }
  0x4f   :  { %192 = vperm.xlu2 %948, %v156_v35  }
  0x52   :  { %947 = vset.pattern.permute.xlu1 %v1065_v63 }
  0x53   :  { %291 = vperm.xlu1 %947, %v1127_v0  }
  0x57   :  { %880 = vperm.xlu2 %948, %v877_v36  }
  0x5b   :  { %949 = vset.pattern.permute.xlu1 %v1062_v2 }
  0x5c   :  { %197 = vperm.xlu1 %949, %v157_v49   ;;  %v1480_v49 = vperm.slane %v1408_v10, 7 }
  0x62   :  { %v168_v59 = vpop.permute.xlu2 %167 }
  0x63   :  { %v1448_v37 = vmul.f32 %v574_v15, %v168_v59  ;;  %v1451_v40 = vmul.f32 %v575_v13, %v168_v59  ;;  %v1454_v41 = vmul.f32 %v1403_v8, %v168_v59  ;;  %v1457_v42 = vmul.f32 %v1426_v48, %v168_v59 }
  0x64   :  { %830 = vperm.xlu1 %949, %v827_v57  }
  0x6b   :  { %v228_v21 = vpop.permute.xlu2 %227 }
  0x6c   :  { %v240_v24 = vmul.f32 %v1412_v12, %v228_v21  ;;  %v241_v43 = vmul.f32 %v1446_v32, %v228_v21  ;;  %v618_v44 = vmul.f32 %v1434_v27, %v228_v21  ;;  %v619_v51 = vmul.f32 %v1437_v14, %v228_v21 }
  0x74   :  { %v1379_v60 = vpop.permute.xlu2 %162 }
  0x75   :  { %v576_v21 = vmul.f32 %v574_v15, %v1379_v60 }
  0x7a   :  { %v232_v58 = vpop.permute.xlu1 %231 }
  0x7b   :  { %v620_v45 = vmul.f32 %v1434_v27, %v232_v58  ;;  %v621_v50 = vmul.f32 %v1437_v14, %v232_v58  ;;  %v1469_v53 = vmul.f32 %v1412_v12, %v232_v58  ;;  %v1472_v35 = vmul.f32 %v1446_v32, %v232_v58 }
  0x7c   :  { %v1385_v62 = vpop.permute.xlu0 %265 }
  0x7d   :  { %v1381_v0 = vpop.permute.xlu2 %261  ;;  %v638_v30 = vmul.f32 %v1423_v17, %v1385_v62  ;;  %v639_v54 = vmul.f32 %v1443_v29, %v1385_v62 }
  0x7e   :  { %v274_v52 = vmul.f32 %v1417_v9, %v1381_v0  ;;  %v275_v57 = vmul.f32 %v1420_v16, %v1381_v0  ;;  %v636_v59 = vmul.f32 %v1423_v17, %v1381_v0 }
  0x82   :  { %v1391_v5 = vpop.permute.xlu1 %223 }
  0x85   :  { %v1389_v2 = vpop.permute.xlu0 %177 }
  0x86   :  { %v1383_v61 = vpop.permute.xlu2 %219  ;;  %v582_v25 = vmul.f32 %v574_v15, %v1389_v2  ;;  %v583_v26 = vmul.f32 %v575_v13, %v1389_v2 }
  0x8b   :  { %v1400_v7 = vpop.permute.xlu1 %257 }
  0x8d   :  { %v173_v22 = vpop.permute.xlu0 %172 }
  0x8e   :  { %v186_v11 = vmul.f32 %v1403_v8, %v173_v22  ;;  %v187_v23 = vmul.f32 %v1426_v48, %v173_v22  ;;  %v580_v56 = vmul.f32 %v574_v15, %v173_v22  ;;  %v581_v36 = vmul.f32 %v575_v13, %v173_v22 }
  0x8f   :  { %v1387_v63 = vpop.permute.xlu2 %295  ;;  %v577_v22 = vmul.f32 %v575_v13, %v1379_v60 }
  0x90   :  { %v308_v46 = vmul.f32 %v1440_v28, %v1387_v63 }
  0x98   :  { %v1393_v47 = vpop.permute.xlu2 %253 }
  0xa1   :  { %v203_v18 = vpop.permute.xlu2 %202 }
  0xa2   :  { %v214_v19 = vadd.f32 %v203_v18, %v186_v11  ;;  %v215_v20 = vadd.f32 %v203_v18, %v187_v23  ;;  %v637_v11 = vmul.f32 %v1443_v29, %v1381_v0  ;;  %v614_v18 = vmul.f32 %v1434_v27, %v1383_v61 }
  0xa3   :  { %v587_v1 = vpop.permute.xlu0 %586 }
  0xa4   :  { %v248_v34 = vadd.f32 %v240_v24, %v214_v19  ;;  %v602_v38 = vpop.permute.xlu1 %601  ;;  %v1495_v19 = vperm.slane %v1408_v10, 3  ;;  %v249_v24 = vadd.f32 %v241_v43, %v215_v20  ;;  %v654_v43 = vmul.f32 %v1477_v3, %v1387_v63 }
  0xa5   :  { %v610_v4 = vadd.f32 %v602_v38, %v582_v25  ;;  %v611_v33 = vadd.f32 %v602_v38, %v583_v26  ;;  %v604_v25 = vadd.f32 %v587_v1, %v576_v21  ;;  %v655_v20 = vmul.f32 %v1480_v49, %v1387_v63 }
  0xa6   :  { %v282_v39 = vadd.f32 %v274_v52, %v248_v34 }
  0xa7   :  { %v628_v31 = vadd.f32 %v620_v45, %v610_v4  ;;  %v629_v55 = vadd.f32 %v621_v50, %v611_v33  ;;  %v605_v4 = vadd.f32 %v587_v1, %v577_v22  ;;  %v615_v33 = vmul.f32 %v1437_v14, %v1383_v61 }
  0xa8   :  { %v1487_v58 = vadd.f32 %v308_v46, %v282_v39  ;;  %v633_v1 = vmul.f32 %v1443_v29, %v1393_v47 }
  0xa9   :  { %v646_v34 = vadd.f32 %v638_v30, %v628_v31  ;;  %v647_v15 = vadd.f32 %v639_v54, %v629_v55  ;;  %v632_v54 = vmul.f32 %v1423_v17, %v1393_v47  ;;  %v309_v31 = vmul.f32 %v1495_v19, %v1387_v63 }
  0xaa   :  { %1982 = vst [vmem:[#allocation7_spill] sm:$0xff] %v1487_v58  ;;  %v910_v45 = vmul.f32 -1.442695, %v1487_v58  ;;  %v622_v55 = vadd.f32 %v614_v18, %v604_v25  ;;  %v182_v63 = vmul.f32 %v1403_v8, %v1379_v60  ;;  %v183_v18 = vmul.f32 %v1426_v48, %v1379_v60 }
  0xab   :  { %v616_v25 = vmul.f32 %v1434_v27, %v1391_v5  ;;  %v1554_v27 = vmul.f32 %v1412_v12, %v1391_v5 }
  0xac   :  { %v597_v26 = vpop.permute.xlu1 %596  ;;  %v1497_v52 = vpop.permute.xlu0 %299  ;;  %983 = vpow2.f32 %v910_v45 }
  0xad   :  { %v608_v23 = vadd.f32 %v597_v26, %v580_v56  ;;  %v609_v38 = vadd.f32 %v597_v26, %v581_v36  ;;  %v656_v0 = vmul.f32 %v1477_v3, %v1497_v52  ;;  %v657_v13 = vmul.f32 %v1480_v49, %v1497_v52 }
  0xae   :  { %v283_v56 = vadd.f32 %v275_v57, %v249_v24  ;;  %v623_v36 = vadd.f32 %v615_v33, %v605_v4  ;;  %v1524_v26 = vmul.f32 %v1417_v9, %v1385_v62  ;;  %v617_v4 = vmul.f32 %v1437_v14, %v1391_v5 }
  0xaf   :  { %v626_v50 = vadd.f32 %v618_v44, %v608_v23  ;;  %v627_v39 = vadd.f32 %v619_v51, %v609_v38  ;;  %v1508_v46 = vadd.f32 %v656_v0, %v646_v34  ;;  %v1510_v30 = vadd.f32 %v657_v13, %v647_v15 }
  0xb0   :  { %v1528_v34 = vmul.f32 %v1420_v16, %v1385_v62  ;;  %v640_v62 = vadd.f32 %v632_v54, %v622_v55  ;;  %v641_v0 = vadd.f32 %v633_v1, %v623_v36  ;;  %v1548_v13 = vadd.f32 %v309_v31, %v283_v56  ;;  %v193_v31 = vpop.permute.xlu2 %192 }
  0xb1   :  { %v925_v44 = vmul.f32 -1.442695, %v1508_v46  ;;  %v926_v51 = vmul.f32 -1.442695, %v1510_v30  ;;  %v644_v21 = vadd.f32 %v636_v59, %v626_v50  ;;  %v645_v22 = vadd.f32 %v637_v11, %v627_v39 }
  0xb2   :  { %1983 = vst [vmem:[#allocation8_spill] sm:$0xff] %v1548_v13  ;;  %v1558_v33 = vmul.f32 %v1446_v32, %v1391_v5  ;;  %v984_v45 = vpop.eup %983  ;;  %v1564_v50 = vmul.f32 %v1412_v12, %v1383_v61  ;;  %v1568_v39 = vmul.f32 %v1446_v32, %v1383_v61  ;;  %v1574_v1 = vmul.f32 %v1417_v9, %v1400_v7 }
  0xb3   :  { %985 = vpow2.f32 %v925_v44  ;;  %v1536_v59 = vadd.f32 %v654_v43, %v644_v21  ;;  %v1538_v11 = vadd.f32 %v655_v20, %v645_v22  ;;  %v188_v5 = vmul.f32 %v1403_v8, %v1389_v2 }
  0xb4   :  { %v592_v57 = vpop.permute.xlu1 %591  ;;  %v1534_v24 = vpop.permute.xlu0 %287  ;;  %987 = vpow2.f32 %v926_v51  ;;  %v911_v44 = vmul.f32 -1.442695, %v1548_v13  ;;  %v189_v51 = vmul.f32 %v1426_v48, %v1389_v2  ;;  %v1588_v8 = vadd.f32 1.0, %v984_v45 }
  0xb5   :  { %v650_v15 = vmul.f32 %v1477_v3, %v1534_v24  ;;  %v651_v23 = vmul.f32 %v1480_v49, %v1534_v24  ;;  %v923_v60 = vmul.f32 -1.442695, %v1536_v59  ;;  %v924_v38 = vmul.f32 -1.442695, %v1538_v11 }
  0xb6   :  { %v606_v55 = vadd.f32 %v592_v57, %v1448_v37  ;;  %v607_v61 = vadd.f32 %v592_v57, %v1451_v40  ;;  %v634_v36 = vmul.f32 %v1423_v17, %v1400_v7  ;;  %v635_v37 = vmul.f32 %v1443_v29, %v1400_v7 }
  0xb7   :  { %v1560_v43 = vadd.f32 %v650_v15, %v640_v62  ;;  %989 = vpow2.f32 %v923_v60  ;;  %v1570_v14 = vadd.f32 %v651_v23, %v641_v0  ;;  %v1596_v22 = vadd.f32 %v193_v31, %v182_v63 }
  0xb8   :  { %991 = vpow2.f32 %v924_v38  ;;  %v1599_v62 = vadd.f32 %v193_v31, %v183_v18  ;;  %v624_v15 = vadd.f32 %v616_v25, %v606_v55  ;;  %v625_v23 = vadd.f32 %v617_v4, %v607_v61 }
  0xb9   :  { %v986_v54 = vpop.eup %985  ;;  %v919_v20 = vmul.f32 -1.442695, %v1560_v43  ;;  %v920_v40 = vmul.f32 -1.442695, %v1570_v14 }
  0xba   :  { %v988_v12 = vpop.eup %987  ;;  %v1581_v32 = vadd.f32 1.0, %v986_v54  ;;  %v1615_v54 = vmul.f32 %v1440_v28, %v1497_v52 }
  0xbb   :  { %v1586_v56 = vadd.f32 1.0, %v988_v12  ;;  %993 = vpow2.f32 %v919_v20  ;;  %v642_v20 = vadd.f32 %v634_v36, %v624_v15  ;;  %v643_v12 = vadd.f32 %v635_v37, %v625_v23 }
  0xbc   :  { %v208_v21 = vpop.permute.xlu1 %207  ;;  %995 = vrcp.f32 %v1581_v32  ;;  %v797_v29 = vand.u32 2147483647, %v1581_v32  ;;  %v799_v60 = vand.u32 2147483648, %v1581_v32  ;;  %vm793_vm0 = vweird.f32 %v1581_v32 }
  0xbd   :  { %v216_v57 = vadd.f32 %v208_v21, %v188_v5  ;;  %v217_v2 = vadd.f32 %v208_v21, %v189_v51  ;;  %997 = vrcp.f32 %v1586_v56  ;;  %v990_v48 = vpop.eup %989  ;;  %v812_v63 = vand.u32 2147483647, %v1586_v56 }
  0xbe   :  { %999 = vpow2.f32 %v911_v44  ;;  %v992_v17 = vpop.eup %991  ;;  %v1603_v38 = vadd.f32 1.0, %v990_v48  ;;  %v814_v0 = vand.u32 2147483648, %v1586_v56  ;;  %vm1620_vm1 = vcmp.eq.f32.partialorder %v797_v29, 8.507059e+37 }
  0xbf   :  { %1001 = vrcp.f32 %v1588_v8  ;;  %v1608_v45 = vadd.f32 1.0, %v992_v17  ;;  %v250_v25 = vadd.f32 %v1469_v53, %v216_v57  ;;  %v251_v4 = vadd.f32 %v1472_v35, %v217_v2 }
  0xc0   :  { %1003 = vpow2.f32 %v920_v40  ;;  %v800_v35 = vor.u32 1.1754944e-38, %v799_v60  ;;  %vm808_vm2 = vweird.f32 %v1586_v56  ;;  %vm1628_vm3 = vcmp.eq.f32.partialorder %v812_v63, 8.507059e+37 }
  0xc1   :  { %v994_v18 = vpop.eup %993  ;;  %1005 = vrcp.f32 %v1603_v38  ;;  %v815_v36 = vor.u32 1.1754944e-38, %v814_v0  ;;  %v767_v37 = vand.u32 2147483647, %v1603_v38  ;;  %v769_v21 = vand.u32 2147483648, %v1603_v38 }
  0xc2   :  { %v996_v5 = vpop.eup %995  ;;  %1007 = vrcp.f32 %v1608_v45  ;;  %v1638_v48 = vadd.f32 1.0, %v994_v18  ;;  %v1641_v15 = vadd.f32 %v1524_v26, %v250_v25  ;;  %v1644_v23 = vadd.f32 %v1528_v34, %v251_v4 }
  0xc3   :  { %v998_v31 = vpop.eup %997  ;;  %v789_v55 = vmul.f32 %v996_v5, %v1581_v32  ;;  %vm763_vm4 = vweird.f32 %v1603_v38  ;;  %v782_v60 = vand.u32 2147483647, %v1608_v45  ;;  %vm794_vm5 = vweird.f32 %v996_v5 }
  0xc4   :  { %v1625_v61 = vpop.eup %999  ;;  %v804_v44 = vmul.f32 %v998_v31, %v1586_v56  ;;  %vm778_vm6 = vweird.f32 %v1608_v45  ;;  %v784_v26 = vand.u32 2147483648, %v1608_v45  ;;  %1009 = vrcp.f32 %v1638_v48  ;;  %vm795_vm8 = vmor %vm793_vm0, %vm794_vm5 }
  0xc5   :  { %v1634_v40 = vpop.eup %1001  ;;  %v1636_v57 = vpop.permute.xlu1 %291  ;;  %v790_v2 = vsub.f32 1.0, %v789_v55  ;;  %vm809_vm7 = vweird.f32 %v998_v31  ;;  %vm1677_vm12 = vcmp.eq.f32.partialorder %v767_v37, 8.507059e+37  ;;  %vm783_vm15 = vcmp.eq.f32.partialorder %v782_v60, 8.507059e+37 }
  0xc6   :  { %v1004_v17 = vpop.eup %1003  ;;  %v805_v29 = vsub.f32 1.0, %v804_v44  ;;  %v652_v63 = vmul.f32 %v1477_v3, %v1636_v57  ;;  %v653_v0 = vmul.f32 %v1480_v49, %v1636_v57  ;;  %vm810_vm10 = vmor %vm808_vm2, %vm809_vm7  ;;  %v785_v53 = vor.u32 1.1754944e-38, %v784_v26 }
  0xc7   :  { %v1006_v18 = vpop.eup %1005  ;;  %v791_v55 = vmul.f32 %v996_v5, %v790_v2  ;;  %v1661_v2 = vadd.f32 1.0, %v1004_v17  ;;  %vm703_vm0 = vweird.f32 %v1638_v48 }
  0xc8   :  { %v1008_v34 = vpop.eup %1007  ;;  %v806_v25 = vmul.f32 %v998_v31, %v805_v29  ;;  %v759_v4 = vmul.f32 %v1006_v18, %v1603_v38  ;;  %v1656_v44 = vadd.f32 %v652_v63, %v642_v20  ;;  %v1659_v49 = vadd.f32 %v653_v0, %v643_v12 }
  0xc9   :  { %v792_v3 = vadd.f32 %v996_v5, %v791_v55  ;;  %v774_v10 = vmul.f32 %v1008_v34, %v1608_v45  ;;  %vm764_vm9 = vweird.f32 %v1006_v18  ;;  %vm779_vm11 = vweird.f32 %v1008_v34 }
  0xca   :  { %v807_v6 = vadd.f32 %v998_v31, %v806_v25  ;;  %v760_v13 = vsub.f32 1.0, %v759_v4  ;;  %v921_v29 = vmul.f32 -1.442695, %v1656_v44  ;;  %v922_v63 = vmul.f32 -1.442695, %v1659_v49  ;;  %v1671_v32 = vpop.eup %1009  ;;  %vm765_vm13 = vmor %vm763_vm4, %vm764_vm9 }
  0xcb   :  { %v796_v58 = vsel %vm795_vm8, %v996_v5, %v792_v3  ;;  %v775_v20 = vsub.f32 1.0, %v774_v10  ;;  %vm780_vm14 = vmor %vm778_vm6, %vm779_vm11 }
  0xcc   :  { %v801_v12 = vsel %vm1620_vm1, %v800_v35, %v796_v58  ;;  %v811_v17 = vsel %vm810_vm10, %v998_v31, %v807_v6  ;;  %v761_v0 = vmul.f32 %v1006_v18, %v760_v13  ;;  %1011 = vpow2.f32 %v921_v29 }
  0xcd   :  { %v824_v55 = vmul.f32 %v801_v12, %v1508_v46  ;;  %v816_v5 = vsel %vm1628_vm3, %v815_v36, %v811_v17  ;;  %v776_v25 = vmul.f32 %v1008_v34, %v775_v20  ;;  %1013 = vpow2.f32 %v922_v63 }
  0xce   :  { %v198_v56 = vpop.permute.xlu1 %197  ;;  %v825_v10 = vmul.f32 %v816_v5, %v1510_v30  ;;  %v762_v4 = vadd.f32 %v1006_v18, %v761_v0  ;;  %v699_v6 = vmul.f32 %v1671_v32, %v1638_v48  ;;  %v770_v13 = vor.u32 1.1754944e-38, %v769_v21 }
  0xcf   :  { %v212_v58 = vadd.f32 %v198_v56, %v1454_v41  ;;  %v213_v46 = vadd.f32 %v198_v56, %v1457_v42  ;;  %845 = vmatpush.msra.mxu0 %v824_v55  ;;  %v777_v31 = vadd.f32 %v1008_v34, %v776_v25  ;;  %1015 = vrcp.f32 %v1661_v2 }
  0xd0   :  { %865 = vmatpush.msra.mxu1 %v825_v10  ;;  %v766_v30 = vsel %vm765_vm13, %v1006_v18, %v762_v4  ;;  %v700_v45 = vsub.f32 1.0, %v699_v6  ;;  %v311_v21 = vmul.f32 %v1495_v19, %v1497_v52  ;;  %v707_v29 = vand.u32 2147483647, %v1638_v48 }
  0xd1   :  { %v1693_v41 = vadd.f32 %v1554_v27, %v212_v58  ;;  %v1696_v42 = vadd.f32 %v1558_v33, %v213_v46  ;;  %v771_v38 = vsel %vm1677_vm12, %v770_v13, %v766_v30  ;;  %v781_v35 = vsel %vm780_vm14, %v1008_v34, %v777_v31 }
  0xd2   :  { %v1012_v51 = vpop.eup %1011  ;;  %v822_v36 = vmul.f32 %v771_v38, %v1536_v59  ;;  %v786_v37 = vsel %vm783_vm15, %v785_v53, %v781_v35  ;;  %v270_v27 = vmul.f32 %v1417_v9, %v1393_v47  ;;  %v244_v33 = vadd.f32 %v1564_v50, %v1596_v22 }
  0xd3   :  { %v1014_v60 = vpop.eup %1013  ;;  %v823_v18 = vmul.f32 %v786_v37, %v1538_v11  ;;  %v1708_v26 = vadd.f32 1.0, %v1012_v51  ;;  %v1712_v34 = vmul.f32 %v1420_v16, %v1393_v47  ;;  %v273_v59 = vmul.f32 %v1420_v16, %v1400_v7 }
  0xd4   :  { %846 = vmatpush.msra.mxu0 %v822_v36  ;;  %v1716_v52 = vadd.f32 1.0, %v1014_v60  ;;  %v1721_v9 = vadd.f32 %v1568_v39, %v1599_v62  ;;  %v709_v11 = vand.u32 2147483648, %v1638_v48  ;;  %v1727_v47 = vadd.f32 %v1615_v54, %v1641_v15 }
  0xd5   :  { %866 = vmatpush.msra.mxu1 %v823_v18  ;;  %1017 = vrcp.f32 %v1708_v26  ;;  %v1729_v50 = vpop.eup %1015  ;;  %v701_v7 = vmul.f32 %v1671_v32, %v700_v45  ;;  %v1734_v16 = vadd.f32 %v311_v21, %v1644_v23  ;;  %v1737_v39 = vadd.f32 1.0, %v1625_v61 }
  0xd6   :  { %1019 = vrcp.f32 %v1716_v52  ;;  %v714_v22 = vmul.f32 %v1729_v50, %v1661_v2  ;;  %v421_v62 = vand.u32 2147483647, %v1588_v8  ;;  %v423_v54 = vand.u32 2147483648, %v1588_v8 }
  0xd7   :  { %v1743_v15 = vadd.f32 %v270_v27, %v244_v33  ;;  %vm704_vm1 = vweird.f32 %v1671_v32  ;;  %vm1747_vm2 = vcmp.eq.f32.partialorder %v707_v29, 8.507059e+37  ;;  %v413_v61 = vmul.f32 %v1634_v40, %v1588_v8 }
  0xd8   :  { %v710_v23 = vor.u32 1.1754944e-38, %v709_v11  ;;  %v715_v63 = vsub.f32 1.0, %v714_v22  ;;  %v722_v12 = vand.u32 2147483647, %v1661_v2  ;;  %v912_v17 = vmul.f32 -1.442695, %v1727_v47  ;;  %vm1773_vm6 = vmor %vm703_vm0, %vm704_vm1 }
  0xd9   :  { %v737_v0 = vand.u32 2147483647, %v1708_v26  ;;  %v702_v55 = vadd.f32 %v1671_v32, %v701_v7  ;;  %v913_v5 = vmul.f32 -1.442695, %v1734_v16  ;;  %1021 = vrcp.f32 %v1737_v39 }
  0xda   :  { %v716_v56 = vmul.f32 %v1729_v50, %v715_v63  ;;  %vm718_vm3 = vweird.f32 %v1661_v2  ;;  %v724_v10 = vand.u32 2147483648, %v1661_v2  ;;  %1023 = vpow2.f32 %v912_v17 }
  0xdb   :  { %v1018_v25 = vpop.eup %1017  ;;  %vm733_vm4 = vweird.f32 %v1708_v26  ;;  %v739_v6 = vand.u32 2147483648, %v1708_v26  ;;  %1025 = vpow2.f32 %v913_v5  ;;  %vm748_vm5 = vweird.f32 %v1716_v52 }
  0xdc   :  { %v1020_v4 = vpop.eup %1019  ;;  %v729_v3 = vmul.f32 %v1018_v25, %v1708_v26  ;;  %v752_v46 = vand.u32 2147483647, %v1716_v52  ;;  %v754_v13 = vand.u32 2147483648, %v1716_v52  ;;  %vm1777_vm7 = vcmp.eq.f32.partialorder %v722_v12, 8.507059e+37 }
  0xdd   :  { %v744_v58 = vmul.f32 %v1020_v4, %v1716_v52  ;;  %vm1781_vm8 = vcmp.eq.f32.partialorder %v737_v0, 8.507059e+37  ;;  %v706_v35 = vsel %vm1773_vm6, %v1671_v32, %v702_v55  ;;  %v280_v48 = vadd.f32 %v1574_v1, %v1693_v41 }
  0xde   :  { %v730_v53 = vsub.f32 1.0, %v729_v3  ;;  %v717_v36 = vadd.f32 %v1729_v50, %v716_v56  ;;  %vm719_vm9 = vweird.f32 %v1729_v50  ;;  %v281_v37 = vadd.f32 %v273_v59, %v1696_v42 }
  0xdf   :  { %v745_v51 = vsub.f32 1.0, %v744_v58  ;;  %v1793_v45 = vpop.eup %1021  ;;  %vm734_vm10 = vweird.f32 %v1018_v25  ;;  %v740_v60 = vor.u32 1.1754944e-38, %v739_v6  ;;  %v414_v27 = vsub.f32 1.0, %v413_v61  ;;  %vm1799_vm12 = vmor %vm718_vm3, %vm719_vm9 }
  0xe0   :  { %v731_v21 = vmul.f32 %v1018_v25, %v730_v53  ;;  %v1024_v33 = vpop.eup %1023  ;;  %vm749_vm11 = vweird.f32 %v1020_v4  ;;  %v755_v32 = vor.u32 1.1754944e-38, %v754_v13  ;;  %v711_v1 = vsel %vm1747_vm2, %v710_v23, %v706_v35  ;;  %vm735_vm14 = vmor %vm733_vm4, %vm734_vm10 }
  0xe1   :  { %v746_v18 = vmul.f32 %v1020_v4, %v745_v51  ;;  %v1026_v41 = vpop.eup %1025  ;;  %v1803_v42 = vadd.f32 1.0, %v1024_v33  ;;  %vm417_vm13 = vweird.f32 %v1588_v8  ;;  %v428_v59 = vmul.f32 %v1793_v45, %v1737_v39  ;;  %vm750_vm15 = vmor %vm748_vm5, %vm749_vm11 }
  0xe2   :  { %v732_v29 = vadd.f32 %v1018_v25, %v731_v21  ;;  %v306_v7 = vmul.f32 %v1440_v28, %v1636_v57  ;;  %v721_v2 = vsel %vm1799_vm12, %v1729_v50, %v717_v36  ;;  %v725_v20 = vor.u32 1.1754944e-38, %v724_v10  ;;  %v885_v21 = vld [vmem:[%s1957_s8] sm:$0xff] }
  0xe3   :  { %v747_v22 = vadd.f32 %v1020_v4, %v746_v18  ;;  %v1816_v61 = vadd.f32 1.0, %v1026_v41  ;;  %1027 = vrcp.f32 %v1803_v42  ;;  %v415_v63 = vmul.f32 %v1634_v40, %v414_v27  ;;  %888 = vperm.xlu0 %950, %v885_v21  }
  0xe4   :  { %v736_v23 = vsel %vm735_vm14, %v1018_v25, %v732_v29  ;;  %v1823_v12 = vadd.f32 %v306_v7, %v280_v48  ;;  %vm753_vm0 = vcmp.eq.f32.partialorder %v752_v46, 8.507059e+37  ;;  %v726_v52 = vsel %vm1777_vm7, %v725_v20, %v721_v2 }
  0xe5   :  { %v741_v26 = vsel %vm1781_vm8, %v740_v60, %v736_v23  ;;  %v751_v17 = vsel %vm750_vm15, %v1020_v4, %v747_v22  ;;  %1029 = vrcp.f32 %v1816_v61  ;;  %v429_v55 = vsub.f32 1.0, %v428_v59 }
  0xe6   :  { %v820_v50 = vmul.f32 %v741_v26, %v1656_v44  ;;  %v756_v0 = vsel %vm753_vm0, %v755_v32, %v751_v17  ;;  %v818_v25 = vmul.f32 %v711_v1, %v1560_v43  ;;  %vm418_vm1 = vweird.f32 %v1634_v40 }
  0xe7   :  { %v821_v5 = vmul.f32 %v756_v0, %v1659_v49  ;;  %v436_v56 = vand.u32 2147483647, %v1737_v39  ;;  %v1836_v10 = vadd.f32 %v1634_v40, %v415_v63  ;;  %v908_v4 = vmul.f32 -1.442695, %v1823_v12  ;;  %vm1861_vm2 = vmor %vm417_vm13, %vm418_vm1 }
  0xe8   :  { %847 = vmatpush.msra.mxu0 %v820_v50  ;;  %v307_v44 = vmul.f32 %v1495_v19, %v1636_v57  ;;  %v304_v3 = vmul.f32 %v1440_v28, %v1534_v24  ;;  %v819_v49 = vmul.f32 %v726_v52, %v1570_v14  ;;  %v424_v43 = vor.u32 1.1754944e-38, %v423_v54  ;;  %v2008_v52 = vld [vmem:[#allocation7_spill] sm:$0xff] }
  0xe9   :  { %867 = vmatpush.msra.mxu1 %v821_v5  ;;  %v279_v6 = vadd.f32 %v1712_v34, %v1721_v9  ;;  %v305_v58 = vmul.f32 %v1495_v19, %v1534_v24  ;;  %v1028_v46 = vpop.eup %1027  ;;  %v430_v13 = vmul.f32 %v1793_v45, %v429_v55  ;;  %1031 = vpow2.f32 %v908_v4  ;;  %v2009_v5 = vld [vmem:[#allocation8_spill] sm:$0xff] }
  0xea   :  { %848 = vmatpush.msra.mxu0 %v818_v25  ;;  %v1851_v57 = vadd.f32 %v307_v44, %v281_v37  ;;  %v1854_v28 = vadd.f32 %v304_v3, %v1743_v15  ;;  %v443_v54 = vmul.f32 %v1028_v46, %v1803_v42  ;;  %vm1867_vm3 = vcmp.eq.f32.partialorder %v421_v62, 8.507059e+37 }
  0xeb   :  { %v1030_v14 = vpop.eup %1029  ;;  %868 = vmatpush.msra.mxu1 %v819_v49  ;;  %vm432_vm4 = vweird.f32 %v1737_v39  ;;  %v438_v34 = vand.u32 2147483648, %v1737_v39  ;;  %v1873_v9 = vadd.f32 %v305_v58, %v279_v6  ;;  %v451_v15 = vand.u32 2147483647, %v1803_v42 }
  0xec   :  { %v458_v31 = vmul.f32 %v1030_v14, %v1816_v61  ;;  %v420_v30 = vsel %vm1861_vm2, %v1634_v40, %v1836_v10  ;;  %vm1881_vm5 = vcmp.eq.f32.partialorder %v436_v56, 8.507059e+37  ;;  %v909_v62 = vmul.f32 -1.442695, %v1851_v57 }
  0xed   :  { %v444_v53 = vsub.f32 1.0, %v443_v54  ;;  %vm433_vm6 = vweird.f32 %v1793_v45  ;;  %v906_v38 = vmul.f32 -1.442695, %v1854_v28  ;;  %v907_v35 = vmul.f32 -1.442695, %v1873_v9 }
  0xee   :  { %v453_v48 = vand.u32 2147483648, %v1803_v42  ;;  %v459_v51 = vsub.f32 1.0, %v458_v31  ;;  %v431_v36 = vadd.f32 %v1793_v45, %v430_v13  ;;  %1033 = vpow2.f32 %v909_v62  ;;  %vm1901_vm10 = vmor %vm432_vm4, %vm433_vm6 }
  0xef   :  { %v445_v40 = vmul.f32 %v1028_v46, %v444_v53  ;;  %vm448_vm7 = vweird.f32 %v1028_v46  ;;  %v468_v37 = vand.u32 2147483648, %v1816_v61  ;;  %1035 = vpow2.f32 %v906_v38  ;;  %v1032_v60 = vpop.eup %1031 }
  0xf0   :  { %v460_v27 = vmul.f32 %v1030_v14, %v459_v51  ;;  %vm463_vm8 = vweird.f32 %v1030_v14  ;;  %v466_v33 = vand.u32 2147483647, %v1816_v61  ;;  %1037 = vpow2.f32 %v907_v35 }
  0xf1   :  { %v446_v18 = vadd.f32 %v1028_v46, %v445_v40  ;;  %vm447_vm9 = vweird.f32 %v1803_v42  ;;  %v439_v1 = vor.u32 1.1754944e-38, %v438_v34  ;;  %v346_v41 = vadd.f32 1.0, %v1032_v60 }
  0xf2   :  { %vm449_vm11 = vmor %vm447_vm9, %vm448_vm7  ;;  %v454_v29 = vor.u32 1.1754944e-38, %v453_v48  ;;  %v461_v11 = vadd.f32 %v1030_v14, %v460_v27  ;;  %vm462_vm12 = vweird.f32 %v1816_v61  ;;  %v435_v42 = vsel %vm1901_vm10, %v1793_v45, %v431_v36 }
  0xf3   :  { %v450_v59 = vsel %vm449_vm11, %v1028_v46, %v446_v18  ;;  %vm452_vm13 = vcmp.eq.f32.partialorder %v451_v15, 8.507059e+37  ;;  %vm464_vm14 = vmor %vm462_vm12, %vm463_vm8  ;;  %v469_v39 = vor.u32 1.1754944e-38, %v468_v37  ;;  %1039 = vrcp.f32 %v346_v41 }
  0xf4   :  { %v1034_v7 = vpop.eup %1033  ;;  %v455_v22 = vsel %vm452_vm13, %v454_v29, %v450_v59  ;;  %v465_v2 = vsel %vm464_vm14, %v1030_v14, %v461_v11  ;;  %vm467_vm15 = vcmp.eq.f32.partialorder %v466_v33, 8.507059e+37  ;;  %v425_v20 = vsel %vm1867_vm3, %v424_v43, %v420_v30  ;;  %v826_v59 = vld [vmem:[%s1954_s5] sm:$0xff] }
  0xf5   :  { %v1036_v23 = vpop.eup %1035  ;;  %v478_v61 = vmul.f32 %v455_v22, %v1727_v47  ;;  %v470_v63 = vsel %vm467_vm15, %v469_v39, %v465_v2  ;;  %v440_v45 = vsel %vm1881_vm5, %v439_v1, %v435_v42  ;;  %v347_v26 = vadd.f32 1.0, %v1034_v7  ;;  %v881_v22 = vpop.permute.xlu2 %880 }
  0xf6   :  { %v1038_v17 = vpop.eup %1037  ;;  %v479_v50 = vmul.f32 %v470_v63, %v1734_v16  ;;  %v344_v0 = vadd.f32 1.0, %v1036_v23  ;;  %v476_v55 = vmul.f32 %v425_v20, %v2008_v52  ;;  %v477_v25 = vmul.f32 %v440_v45, %v2009_v5  ;;  %v831_v2 = vpop.permute.xlu1 %830 }
  0xf7   :  { %849 = vmatpush.msra.mxu0 %v478_v61  ;;  %1041 = vrcp.f32 %v347_v26  ;;  %v1919_v47 = vadd.f32 1.0, %v1038_v17  ;;  %v391_v4 = vand.u32 2147483647, %v346_v41  ;;  %v393_v44 = vand.u32 2147483648, %v346_v41  ;;  %v2012_v61 = vld [vmem:[#allocation5_spill] sm:$0xff] }
  0xf8   :  { %869 = vmatpush.msra.mxu1 %v479_v50  ;;  %1043 = vrcp.f32 %v344_v0  ;;  %vm387_vm1 = vweird.f32 %v346_v41  ;;  %vm402_vm3 = vweird.f32 %v347_v26  ;;  %v406_v19 = vand.u32 2147483647, %v347_v26 }
  0xf9   :  { %v1040_v56 = vpop.eup %1039  ;;  %850 = vmatpush.msra.mxu0 %v476_v55  ;;  %1045 = vrcp.f32 %v1919_v47  ;;  %vm1922_vm2 = vcmp.eq.f32.partialorder %v391_v4, 8.507059e+37  ;;  %v394_v46 = vor.u32 1.1754944e-38, %v393_v44  ;;  %v408_v34 = vand.u32 2147483648, %v347_v26 }
  0xfa   :  { %870 = vmatpush.msra.mxu1 %v477_v25  ;;  %v383_v10 = vmul.f32 %v1040_v56, %v346_v41  ;;  %vm388_vm0 = vweird.f32 %v1040_v56  ;;  %vm357_vm5 = vweird.f32 %v344_v0  ;;  %v363_v31 = vand.u32 2147483648, %v344_v0 }
  0xfb   :  { %vm389_vm4 = vmor %vm387_vm1, %vm388_vm0  ;;  %v361_v35 = vand.u32 2147483647, %v344_v0  ;;  %vm407_vm8 = vcmp.eq.f32.partialorder %v406_v19, 8.507059e+37  ;;  %v409_v40 = vor.u32 1.1754944e-38, %v408_v34  ;;  %v378_v60 = vand.u32 2147483648, %v1919_v47 }
  0xfc   :  { %v384_v16 = vsub.f32 1.0, %v383_v10  ;;  %v364_v21 = vor.u32 1.1754944e-38, %v363_v31  ;;  %v376_v18 = vand.u32 2147483647, %v1919_v47  ;;  %vm372_vm13 = vweird.f32 %v1919_v47 }
  0xfd   :  { %v1042_v3 = vpop.eup %1041  ;;  %vm362_vm12 = vcmp.eq.f32.partialorder %v361_v35, 8.507059e+37  ;;  %v379_v42 = vor.u32 1.1754944e-38, %v378_v60  ;;  %vm833_vm15 = vcmask 523264   ;;  %v883_v63 = vmul.f32 %v881_v22, %v2012_v61 }
  0xfe   :  { %v1044_v49 = vpop.eup %1043  ;;  %v385_v43 = vmul.f32 %v1040_v56, %v384_v16  ;;  %v398_v6 = vmul.f32 %v1042_v3, %v347_v26  ;;  %vm403_vm6 = vweird.f32 %v1042_v3  ;;  %vm377_vm0 = vcmp.eq.f32.partialorder %v376_v18, 8.507059e+37 }
  0xff   :  { %v353_v13 = vmul.f32 %v1044_v49, %v344_v0  ;;  %v1046_v24 = vpop.eup %1045  ;;  %vm358_vm7 = vweird.f32 %v1044_v49  ;;  %vm404_vm9 = vmor %vm402_vm3, %vm403_vm6  ;;  %v2013_v0 = vld [vmem:[#allocation6_spill] sm:$0xff] }
 0x100   :  { %v386_v14 = vadd.f32 %v1040_v56, %v385_v43  ;;  %v399_v54 = vsub.f32 1.0, %v398_v6  ;;  %v368_v62 = vmul.f32 %v1046_v24, %v1919_v47  ;;  %vm359_vm10 = vmor %vm357_vm5, %vm358_vm7  ;;  %vm373_vm11 = vweird.f32 %v1046_v24 }
 0x101   :  { %v354_v15 = vsub.f32 1.0, %v353_v13  ;;  %vm374_vm14 = vmor %vm372_vm13, %vm373_vm11  ;;  %v884_v52 = vmul.f32 %v881_v22, %v2013_v0 }
 0x102   :  { %v390_v30 = vsel %vm389_vm4, %v1040_v56, %v386_v14  ;;  %v400_v8 = vmul.f32 %v1042_v3, %v399_v54  ;;  %v369_v36 = vsub.f32 1.0, %v368_v62 }
 0x103   :  { %v395_v53 = vsel %vm1922_vm2, %v394_v46, %v390_v30  ;;  %v355_v38 = vmul.f32 %v1044_v49, %v354_v15 }
 0x104   :  { %v474_v48 = vmul.f32 %v395_v53, %v1823_v12  ;;  %v401_v51 = vadd.f32 %v1042_v3, %v400_v8  ;;  %v370_v33 = vmul.f32 %v1046_v24, %v369_v36 }
 0x105   :  { %v356_v37 = vadd.f32 %v1044_v49, %v355_v38 }
 0x106   :  { %851 = vmatpush.msra.mxu0 %v474_v48  ;;  %v405_v27 = vsel %vm404_vm9, %v1042_v3, %v401_v51  ;;  %v371_v29 = vadd.f32 %v1046_v24, %v370_v33 }
 0x107   :  { %v410_v32 = vsel %vm407_vm8, %v409_v40, %v405_v27  ;;  %v360_v12 = vsel %vm359_vm10, %v1044_v49, %v356_v37 }
 0x108   :  { %v475_v1 = vmul.f32 %v410_v32, %v1851_v57  ;;  %v365_v41 = vsel %vm362_vm12, %v364_v21, %v360_v12  ;;  %v375_v39 = vsel %vm374_vm14, %v1046_v24, %v371_v29 }
 0x109   :  { %v472_v11 = vmul.f32 %v365_v41, %v1854_v28  ;;  %v380_v7 = vsel %vm377_vm0, %v379_v42, %v375_v39 }
 0x10a   :  { %871 = vmatpush.msra.mxu1 %v475_v1  ;;  %v473_v57 = vmul.f32 %v380_v7, %v1873_v9 }
 0x10b   :  { %852 = vmatpush.msra.mxu0 %v472_v11 }
 0x10c   :  { %927 = vmatmul.msk.f32.vlgmr.msra.gmra.mxu0 %vm833_vm15, %v826_v59  ;;  %872 = vmatpush.msra.mxu1 %v473_v57 }
 0x10d   :  { %928 = vmatmul.msk.f32.vlgmr.msra.gmra.mxu1 %vm833_vm15, %v826_v59 }
 0x155   :  { %v889_v20 = vpop.permute.xlu0 %888 }
 0x189   :  { %v854_v28 = vpop.f32.mrf.mxu0 }
 0x18a   :  { %v855_v23 = vadd.f32 %v854_v28, %v831_v2  ;;  %v874_v45 = vpop.f32.mrf.mxu1 }
 0x18b   :  { %v875_v17 = vadd.f32 %v874_v45, %v831_v2 }
 0x18c   :  { %v891_v26 = vmul.f32 %v889_v20, %v855_v23 }
 0x18d   :  { %v892_v55 = vmul.f32 %v889_v20, %v875_v17 }
 0x18e   :  { %v893_v50 = vadd.f32 %v891_v26, %v883_v63 }
 0x18f   :  { %v894_v9 = vadd.f32 %v892_v55, %v884_v52 }
 0x190   :  { %895 = vst [vmem:[%s1959_s10] sm:$0xff] %v893_v50 }
 0x191   :  { %896 = vst [vmem:[%s1959_s10 + $0x8] sm:$0xff] %v894_v9 }
 0x192   :  { %901 = vsyncpa [#allocation3], 1 }

</bundles_post_ra>
